<compile_context>
chip_gen: v5e
topology: v5e:2x2
jax: 0.10.0
libtpu: 0.0.40
codegen_flags: <defaults>
</compile_context>

<pallas_src>
import jax
import jax.numpy as jnp
from jax import lax
from jax.experimental import pallas as pl
from jax.experimental.pallas import tpu as pltpu

_NEG = -1e30  # "minus infinity" that stays finite under f32 arithmetic


def _round_up(x, m):
    return (x + m - 1) // m * m


def _cdiv(a, b):
    return (a + b - 1) // b


def _make_kernel(*, tb, tc, nk, rows_per_step, b_real, unroll_issue):
    """Build the kernel with static tile sizes / counts baked in."""

    def kernel(lab_sm,                                        # scalar-prefetch labels (SMEM)
               feat_ref, lab_ref, w_ref, b_ref, centers_hbm,  # inputs
               ce_out_ref, cen_out_ref,                       # outputs (per-tile scalars)
               m_sc, l_sc, t_sc, cgather, gsem):              # scratch
        i = pl.program_id(0)
        k = pl.program_id(1)

        # ---- (a) issue this class-tile's share of the centers[label] row gather.
        # Rows are spread over the first (nk-1) class tiles so the scalar-unit DMA
        # issue overlaps the matmul loop instead of stalling tile k==0, and every
        # copy is in flight before the k==nk-1 epilogue waits.
        base = k * rows_per_step

        def _start(r):
            lab = lab_sm[i * tb + r]
            pltpu.make_async_copy(centers_hbm.at[lab], cgather.at[r],
                                  gsem.at[0]).start()

        @pl.when(base < tb)
        def _():
            if unroll_issue:
                # small static trip count: fully unroll at trace time
                for j in range(rows_per_step):
                    r = base + j

                    @pl.when(r < tb)
                    def _(r=r):
                        _start(r)
            else:
                def issue(j, carry):
                    r = base + j

                    @pl.when(r < tb)
                    def _():
                        _start(r)
                    return carry

                lax.fori_loop(0, rows_per_step, issue, 0)

        # ---- (b) init online-logsumexp state on the first class tile.
        @pl.when(k == 0)
        def _():
            m_sc[...] = jnp.full((tb, 1), _NEG, jnp.float32)
            l_sc[...] = jnp.zeros((tb, 1), jnp.float32)
            t_sc[...] = jnp.zeros((tb, 1), jnp.float32)

        # ---- (c) logits tile + online logsumexp update.
        feat = feat_ref[...]                                  # (TB, Dp), native dtype
        logits = lax.dot_general(feat, w_ref[...],            # contract on D, no W.T
                                 (((1,), (1,)), ((), ())),
                                 preferred_element_type=jnp.float32)   # (TB, TC)
        # Bias of padded class columns is -1e30 (set in the wrapper), so padded
        # logits are already ~-inf — no per-tile mask needed.
        logits = logits + b_ref[...]

        col = k * tc + lax.broadcasted_iota(jnp.int32, (tb, tc), 1)
        lab = lab_ref[...]                                    # (TB, 1) int32
        # target logit: the label's column lives in exactly one class tile.
        t_sc[...] += jnp.sum(jnp.where(col == lab, logits, 0.0),
                             axis=-1, keepdims=True)

        m_new = jnp.maximum(m_sc[...], jnp.max(logits, axis=-1, keepdims=True))
        alpha = jnp.exp(m_sc[...] - m_new)
        l_sc[...] = alpha * l_sc[...] + jnp.sum(jnp.exp(logits - m_new),
                                                axis=-1, keepdims=True)
        m_sc[...] = m_new

        # ---- (d) last class tile: ONE aggregated wait for the whole gather, then
        # reduce this batch tile to two scalars (padded batch rows masked out).
        @pl.when(k == nk - 1)
        def _():
            # Invariant: exactly tb row copies were issued for this batch tile, all
            # signalling gsem[0] and all transferring Dp*itemsize bytes, so a single
            # wait whose descriptor matches the full cgather buffer consumes exactly
            # the signalled amount (src is only used for descriptor shape).
            pltpu.make_async_copy(cgather, cgather, gsem.at[0]).wait()

            lse = m_sc[...] + jnp.log(l_sc[...])              # (TB, 1)
            ce_rows = lse - t_sc[...]                         # per-row CE term

            diff = feat.astype(jnp.float32) - cgather[...].astype(jnp.float32)
            cen_rows = 0.5 * jnp.sum(diff * diff, axis=-1, keepdims=True)

            row = i * tb + lax.broadcasted_iota(jnp.int32, (tb, 1), 0)
            valid = row < b_real                              # b_real is static
            ce_out_ref[...] = jnp.sum(jnp.where(valid, ce_rows, 0.0)).reshape(1, 1, 1)
            cen_out_ref[...] = jnp.sum(jnp.where(valid, cen_rows, 0.0)).reshape(1, 1, 1)

    return kernel


def verification_classifier_loss(feature, label, fc_w, fc_b, centers, *,
                                 tb=None, tc=None, compute_dtype=None):
    """feature: (B, D), label: (B,) int, fc_w: (C, D), fc_b: (C,), centers: (C, D).

    compute_dtype: optional cast for feature/fc_w (e.g. jnp.bfloat16) — halves the
    dominant W HBM stream; accumulation stays f32.  Default keeps the caller dtype.
    """
    B, D = feature.shape
    C, _ = fc_w.shape

    io_dtype = (jnp.dtype(compute_dtype) if compute_dtype is not None
                else jnp.result_type(feature.dtype, fc_w.dtype))
    cen_dtype = centers.dtype

    Dp = _round_up(D, 128)
    Bp8 = _round_up(B, 8)

    # ---- class tile: 512 is plenty (the exp-per-logit EUP cost is tiling-invariant;
    # growing TC further mostly just costs VMEM).
    TC = _round_up(min(tc if tc is not None else 512, _round_up(C, 128)), 128)

    # ---- batch tile: as large as VMEM allows so fc_w is streamed at most nb times.
    # nb=1 for small batches; nb=2 for large batches so the "parallel" batch axis
    # still shards across both v7x TensorCores.
    if tb is not None:
        TB = _round_up(min(tb, Bp8), 8)
    else:
        target_nb = 2 if Bp8 >= 512 else 1
        TB = _round_up(_cdiv(Bp8, target_nb), 8)

    # ---- VMEM budget: 64 MiB physical/TC on v7x vs 128 MiB on v5e/v6e.
    try:
        phys_vmem = int(pltpu.get_tpu_info().vmem_capacity_bytes)
        if phys_vmem <= 0:
            raise ValueError("bad vmem size")
    except Exception:                       # conservative (v7x-sized) fallback
        phys_vmem = 64 * 1024 * 1024
    vmem_limit = min((phys_vmem * 3) // 4, 96 * 1024 * 1024)
    budget = (vmem_limit * 7) // 10

    in_item = int(jnp.dtype(io_dtype).itemsize)
    cen_item = int(jnp.dtype(cen_dtype).itemsize)

    def vmem_estimate(tb_, tc_):
        return (2 * tb_ * Dp * in_item          # feature tile, double buffered
                + 2 * tc_ * Dp * in_item        # fc_w tile, double buffered
                + 4 * tc_ * 4                   # bias tile, double buffered
                + 5 * tb_ * tc_ * 4             # live f32 logits/exp temporaries
                + tb_ * Dp * cen_item           # gathered centers[label] rows
                + 3 * tb_ * 4 + (1 << 14))      # row accumulators + slack

    while vmem_estimate(TB, TC) > budget and TB > 8:
        TB = max(8, _round_up(TB // 2, 8))
    while vmem_estimate(TB, TC) > budget and TC > 128:
        TC = max(128, _round_up(TC // 2, 128))

    Cp = _round_up(C, TC)
    Bp = _round_up(B, TB)
    nb, nc = Bp // TB, Cp // TC
    rows_per_step = _cdiv(TB, max(nc - 1, 1))   # spread gather issue over first nk-1 tiles
    unroll_issue = rows_per_step <= 32

    def pad_to(x, shape):
        if tuple(x.shape) == tuple(shape):
            return x
        return jnp.pad(x, [(0, s - d) for d, s in zip(x.shape, shape)])

    feat_p = pad_to(feature, (Bp, Dp)).astype(io_dtype)
    w_p = pad_to(fc_w, (Cp, Dp)).astype(io_dtype)
    # Padded class columns get a -1e30 bias so they vanish from the logsumexp with no
    # in-kernel masking (padded W rows are zero, so their matmul contribution is 0).
    b_p = jnp.full((1, Cp), _NEG, jnp.float32).at[0, :C].set(fc_b.astype(jnp.float32))
    cen_p = pad_to(centers, (C, Dp))                 # only D padded; rows gathered by label
    lab_p = pad_to(label.astype(jnp.int32), (Bp,))   # padded rows use label 0 (masked in-kernel)
    lab2d = lab_p.reshape(Bp, 1)

    kernel = _make_kernel(tb=TB, tc=TC, nk=nc, rows_per_step=rows_per_step,
                          b_real=B, unroll_issue=unroll_issue)

    grid_spec = pltpu.PrefetchScalarGridSpec(
        num_scalar_prefetch=1,                       # labels -> SMEM (DMA addressing)
        grid=(nb, nc),
        in_specs=[
            pl.BlockSpec((TB, Dp), lambda i, k, lab: (i, 0)),   # feature (resident over k)
            pl.BlockSpec((TB, 1), lambda i, k, lab: (i, 0)),    # labels as a VMEM column
            pl.BlockSpec((TC, Dp), lambda i, k, lab: (k, 0)),   # fc weight tile
            pl.BlockSpec((1, TC), lambda i, k, lab: (0, k)),    # fc bias tile (f32, -1e30 pad)
            pl.BlockSpec(memory_space=pl.ANY),                  # centers stay in HBM
        ],
        out_specs=[
            pl.BlockSpec((1, 1, 1), lambda i, k, lab: (i, 0, 0)),  # per-tile CE sum
            pl.BlockSpec((1, 1, 1), lambda i, k, lab: (i, 0, 0)),  # per-tile center sum
        ],
        scratch_shapes=[
            pltpu.VMEM((TB, 1), jnp.float32),        # running max m
            pltpu.VMEM((TB, 1), jnp.float32),        # running sum l
            pltpu.VMEM((TB, 1), jnp.float32),        # target logit
            pltpu.VMEM((TB, Dp), cen_dtype),         # gathered centers[label] rows
            pltpu.SemaphoreType.DMA((1,)),           # gather semaphore
        ],
    )

    cost = pl.CostEstimate(
        flops=2 * Bp * Cp * Dp + 3 * Bp * Dp,
        transcendentals=Bp * Cp + Bp,
        bytes_accessed=(Bp * Dp * in_item            # features
                        + nb * Cp * Dp * in_item     # fc_w streamed once per batch tile
                        + nb * Cp * 4                # bias
                        + 2 * Bp * 4                 # labels (SMEM + VMEM column)
                        + Bp * Dp * cen_item         # gathered center rows
                        + 2 * nb * 4),               # scalar partial outputs
    )

    ce_out, cen_out = pl.pallas_call(
        kernel,
        out_shape=[jax.ShapeDtypeStruct((nb, 1, 1), jnp.float32),
                   jax.ShapeDtypeStruct((nb, 1, 1), jnp.float32)],
        grid_spec=grid_spec,
        compiler_params=pltpu.CompilerParams(
            dimension_semantics=("parallel", "arbitrary"),
            vmem_limit_bytes=int(vmem_limit)),
        cost_estimate=cost,
    )(lab_p, feat_p, lab2d, w_p, b_p, cen_p)

    # Tiny finalization over nb per-tile scalars.
    softmax_loss = jnp.sum(ce_out) / jnp.float32(B)
    center_loss = jnp.sum(cen_out)
    return center_loss * jnp.float32(0.001) + softmax_loss


def _reference_loss(feature, label, fc_w, fc_b, centers):
    logits = feature @ fc_w.T + fc_b
    lse = jax.scipy.special.logsumexp(logits, axis=-1)
    ce = jnp.mean(lse - jnp.take_along_axis(logits, label[:, None], axis=-1)[:, 0])
    diff = feature - centers[label]
    center = 0.5 * jnp.sum(diff * diff)
    return 0.001 * center + ce


if __name__ == "__main__":
    key = jax.random.PRNGKey(0)
    B, D, C = 8, 32, 16  # batch, feat_dim, num_classes

    k_feat, k_lab, k_w, k_b, k_c = jax.random.split(key, 5)
    feature = jax.random.normal(k_feat, (B, D), dtype=jnp.float32)
    label = jax.random.randint(k_lab, (B,), 0, C, dtype=jnp.int32)

    # Deterministic synthetic parameters (nn.Linear-like init + randn centers).
    bound = 1.0 / (D ** 0.5)
    fc_w = jax.random.uniform(k_w, (C, D), jnp.float32, -bound, bound)
    fc_b = jax.random.uniform(k_b, (C,), jnp.float32, -bound, bound)
    centers = jax.random.normal(k_c, (C, D), dtype=jnp.float32)

    loss = verification_classifier_loss(feature, label, fc_w, fc_b, centers)
    loss = jax.block_until_ready(loss)

    ref = _reference_loss(feature, label, fc_w, fc_b, centers)
    assert jnp.allclose(loss, ref, rtol=1e-5, atol=1e-5), (loss, ref)

    print("KERNEL_OK")
</pallas_src>

<mosaic_0001>
module attributes {stable_mosaic.version = 11 : i64} {
  func.func @kernel(%arg0: i32, %arg1: i32, %arg2: memref<8xi32, #tpu.memory_space<smem>>, %arg3: memref<8x128xf32, #tpu.memory_space<vmem>>, %arg4: memref<8x1xi32, #tpu.memory_space<vmem>>, %arg5: memref<128x128xf32, #tpu.memory_space<vmem>>, %arg6: memref<1x128xf32, #tpu.memory_space<vmem>>, %arg7: memref<16x128xf32, #tpu.memory_space<any>>, %arg8: memref<1x1x1xf32, #tpu.memory_space<vmem>>, %arg9: memref<1x1x1xf32, #tpu.memory_space<vmem>>, %arg10: memref<8x1xf32, #tpu.memory_space<vmem>>, %arg11: memref<8x1xf32, #tpu.memory_space<vmem>>, %arg12: memref<8x1xf32, #tpu.memory_space<vmem>>, %arg13: memref<8x128xf32, #tpu.memory_space<vmem>>, %arg14: memref<1x!tpu.dma_semaphore, #tpu.memory_space<semaphore_mem>>) attributes {dimension_semantics = [#tpu.dimension_semantics<parallel>, #tpu.dimension_semantics<arbitrary>], iteration_bounds = array<i64: 1, 1>, scalar_prefetch = 1 : i64, scratch_operands = 5 : i64, tpu.core_type = #tpu.core_type<tc>, window_params = [{transform_indices = @transform_0, window_bounds = array<i64: 8, 128>}, {transform_indices = @transform_1, window_bounds = array<i64: 8, 1>}, {transform_indices = @transform_2, window_bounds = array<i64: 128, 128>}, {transform_indices = @transform_3, window_bounds = array<i64: 1, 128>}, {}, {transform_indices = @transform_5, window_bounds = array<i64: 1, 1, 1>}, {transform_indices = @transform_6, window_bounds = array<i64: 1, 1, 1>}]} {
    %c8_i32 = arith.constant 8 : i32
    %0 = arith.muli %arg1, %c8_i32 : i32
    %c8_i32_0 = arith.constant 8 : i32
    %1 = arith.cmpi slt, %0, %c8_i32_0 : i32
    %2 = arith.extui %1 : i1 to i32
    %c0_i32 = arith.constant 0 : i32
    %3 = arith.cmpi ne, %2, %c0_i32 : i32
    scf.if %3 {
      %c0_i32_30 = arith.constant 0 : i32
      %47 = arith.addi %0, %c0_i32_30 : i32
      %c8_i32_31 = arith.constant 8 : i32
      %48 = arith.cmpi slt, %47, %c8_i32_31 : i32
      %49 = arith.extui %48 : i1 to i32
      %c0_i32_32 = arith.constant 0 : i32
      %50 = arith.cmpi ne, %49, %c0_i32_32 : i32
      scf.if %50 {
        %c8_i32_47 = arith.constant 8 : i32
        %79 = arith.muli %arg0, %c8_i32_47 : i32
        %80 = arith.addi %79, %47 : i32
        %81 = arith.index_cast %80 : i32 to index
        %82 = memref.load %arg2[%81] : memref<8xi32, #tpu.memory_space<smem>>
        %c0_i32_48 = arith.constant 0 : i32
        %c0_i32_49 = arith.constant 0 : i32
        %83 = tpu.memref_slice %arg7[%82, %c0_i32_49] : memref<16x128xf32, #tpu.memory_space<any>> -> memref<1x128xf32, #tpu.memory_space<any>>
        %84 = tpu.memref_squeeze %83 : memref<1x128xf32, #tpu.memory_space<any>> -> memref<128xf32, #tpu.memory_space<any>>
        %c0_i32_50 = arith.constant 0 : i32
        %85 = tpu.memref_slice %arg13[%47, %c0_i32_50] : memref<8x128xf32, #tpu.memory_space<vmem>> -> memref<1x128xf32, #tpu.memory_space<vmem>>
        %86 = tpu.memref_squeeze %85 : memref<1x128xf32, #tpu.memory_space<vmem>> -> memref<128xf32, #tpu.memory_space<vmem>>
        %87 = tpu.memref_slice %arg14[%c0_i32_48] : memref<1x!tpu.dma_semaphore, #tpu.memory_space<semaphore_mem>> -> memref<1x!tpu.dma_semaphore, #tpu.memory_space<semaphore_mem>>
        %88 = tpu.memref_squeeze %87 : memref<1x!tpu.dma_semaphore, #tpu.memory_space<semaphore_mem>> -> memref<!tpu.dma_semaphore, #tpu.memory_space<semaphore_mem>>
        tpu.enqueue_dma source(%84 : memref<128xf32, #tpu.memory_space<any>>) target(%86 : memref<128xf32, #tpu.memory_space<vmem>>) target_semaphore(%88 : memref<!tpu.dma_semaphore, #tpu.memory_space<semaphore_mem>>)
      } else {
      }
      %c1_i32 = arith.constant 1 : i32
      %51 = arith.addi %0, %c1_i32 : i32
      %c8_i32_33 = arith.constant 8 : i32
      %52 = arith.cmpi slt, %51, %c8_i32_33 : i32
      %53 = arith.extui %52 : i1 to i32
      %c0_i32_34 = arith.constant 0 : i32
      %54 = arith.cmpi ne, %53, %c0_i32_34 : i32
      scf.if %54 {
        %c8_i32_47 = arith.constant 8 : i32
        %79 = arith.muli %arg0, %c8_i32_47 : i32
        %80 = arith.addi %79, %51 : i32
        %81 = arith.index_cast %80 : i32 to index
        %82 = memref.load %arg2[%81] : memref<8xi32, #tpu.memory_space<smem>>
        %c0_i32_48 = arith.constant 0 : i32
        %c0_i32_49 = arith.constant 0 : i32
        %83 = tpu.memref_slice %arg7[%82, %c0_i32_49] : memref<16x128xf32, #tpu.memory_space<any>> -> memref<1x128xf32, #tpu.memory_space<any>>
        %84 = tpu.memref_squeeze %83 : memref<1x128xf32, #tpu.memory_space<any>> -> memref<128xf32, #tpu.memory_space<any>>
        %c0_i32_50 = arith.constant 0 : i32
        %85 = tpu.memref_slice %arg13[%51, %c0_i32_50] : memref<8x128xf32, #tpu.memory_space<vmem>> -> memref<1x128xf32, #tpu.memory_space<vmem>>
        %86 = tpu.memref_squeeze %85 : memref<1x128xf32, #tpu.memory_space<vmem>> -> memref<128xf32, #tpu.memory_space<vmem>>
        %87 = tpu.memref_slice %arg14[%c0_i32_48] : memref<1x!tpu.dma_semaphore, #tpu.memory_space<semaphore_mem>> -> memref<1x!tpu.dma_semaphore, #tpu.memory_space<semaphore_mem>>
        %88 = tpu.memref_squeeze %87 : memref<1x!tpu.dma_semaphore, #tpu.memory_space<semaphore_mem>> -> memref<!tpu.dma_semaphore, #tpu.memory_space<semaphore_mem>>
        tpu.enqueue_dma source(%84 : memref<128xf32, #tpu.memory_space<any>>) target(%86 : memref<128xf32, #tpu.memory_space<vmem>>) target_semaphore(%88 : memref<!tpu.dma_semaphore, #tpu.memory_space<semaphore_mem>>)
      } else {
      }
      %c2_i32 = arith.constant 2 : i32
      %55 = arith.addi %0, %c2_i32 : i32
      %c8_i32_35 = arith.constant 8 : i32
      %56 = arith.cmpi slt, %55, %c8_i32_35 : i32
      %57 = arith.extui %56 : i1 to i32
      %c0_i32_36 = arith.constant 0 : i32
      %58 = arith.cmpi ne, %57, %c0_i32_36 : i32
      scf.if %58 {
        %c8_i32_47 = arith.constant 8 : i32
        %79 = arith.muli %arg0, %c8_i32_47 : i32
        %80 = arith.addi %79, %55 : i32
        %81 = arith.index_cast %80 : i32 to index
        %82 = memref.load %arg2[%81] : memref<8xi32, #tpu.memory_space<smem>>
        %c0_i32_48 = arith.constant 0 : i32
        %c0_i32_49 = arith.constant 0 : i32
        %83 = tpu.memref_slice %arg7[%82, %c0_i32_49] : memref<16x128xf32, #tpu.memory_space<any>> -> memref<1x128xf32, #tpu.memory_space<any>>
        %84 = tpu.memref_squeeze %83 : memref<1x128xf32, #tpu.memory_space<any>> -> memref<128xf32, #tpu.memory_space<any>>
        %c0_i32_50 = arith.constant 0 : i32
        %85 = tpu.memref_slice %arg13[%55, %c0_i32_50] : memref<8x128xf32, #tpu.memory_space<vmem>> -> memref<1x128xf32, #tpu.memory_space<vmem>>
        %86 = tpu.memref_squeeze %85 : memref<1x128xf32, #tpu.memory_space<vmem>> -> memref<128xf32, #tpu.memory_space<vmem>>
        %87 = tpu.memref_slice %arg14[%c0_i32_48] : memref<1x!tpu.dma_semaphore, #tpu.memory_space<semaphore_mem>> -> memref<1x!tpu.dma_semaphore, #tpu.memory_space<semaphore_mem>>
        %88 = tpu.memref_squeeze %87 : memref<1x!tpu.dma_semaphore, #tpu.memory_space<semaphore_mem>> -> memref<!tpu.dma_semaphore, #tpu.memory_space<semaphore_mem>>
        tpu.enqueue_dma source(%84 : memref<128xf32, #tpu.memory_space<any>>) target(%86 : memref<128xf32, #tpu.memory_space<vmem>>) target_semaphore(%88 : memref<!tpu.dma_semaphore, #tpu.memory_space<semaphore_mem>>)
      } else {
      }
      %c3_i32 = arith.constant 3 : i32
      %59 = arith.addi %0, %c3_i32 : i32
      %c8_i32_37 = arith.constant 8 : i32
      %60 = arith.cmpi slt, %59, %c8_i32_37 : i32
      %61 = arith.extui %60 : i1 to i32
      %c0_i32_38 = arith.constant 0 : i32
      %62 = arith.cmpi ne, %61, %c0_i32_38 : i32
      scf.if %62 {
        %c8_i32_47 = arith.constant 8 : i32
        %79 = arith.muli %arg0, %c8_i32_47 : i32
        %80 = arith.addi %79, %59 : i32
        %81 = arith.index_cast %80 : i32 to index
        %82 = memref.load %arg2[%81] : memref<8xi32, #tpu.memory_space<smem>>
        %c0_i32_48 = arith.constant 0 : i32
        %c0_i32_49 = arith.constant 0 : i32
        %83 = tpu.memref_slice %arg7[%82, %c0_i32_49] : memref<16x128xf32, #tpu.memory_space<any>> -> memref<1x128xf32, #tpu.memory_space<any>>
        %84 = tpu.memref_squeeze %83 : memref<1x128xf32, #tpu.memory_space<any>> -> memref<128xf32, #tpu.memory_space<any>>
        %c0_i32_50 = arith.constant 0 : i32
        %85 = tpu.memref_slice %arg13[%59, %c0_i32_50] : memref<8x128xf32, #tpu.memory_space<vmem>> -> memref<1x128xf32, #tpu.memory_space<vmem>>
        %86 = tpu.memref_squeeze %85 : memref<1x128xf32, #tpu.memory_space<vmem>> -> memref<128xf32, #tpu.memory_space<vmem>>
        %87 = tpu.memref_slice %arg14[%c0_i32_48] : memref<1x!tpu.dma_semaphore, #tpu.memory_space<semaphore_mem>> -> memref<1x!tpu.dma_semaphore, #tpu.memory_space<semaphore_mem>>
        %88 = tpu.memref_squeeze %87 : memref<1x!tpu.dma_semaphore, #tpu.memory_space<semaphore_mem>> -> memref<!tpu.dma_semaphore, #tpu.memory_space<semaphore_mem>>
        tpu.enqueue_dma source(%84 : memref<128xf32, #tpu.memory_space<any>>) target(%86 : memref<128xf32, #tpu.memory_space<vmem>>) target_semaphore(%88 : memref<!tpu.dma_semaphore, #tpu.memory_space<semaphore_mem>>)
      } else {
      }
      %c4_i32 = arith.constant 4 : i32
      %63 = arith.addi %0, %c4_i32 : i32
      %c8_i32_39 = arith.constant 8 : i32
      %64 = arith.cmpi slt, %63, %c8_i32_39 : i32
      %65 = arith.extui %64 : i1 to i32
      %c0_i32_40 = arith.constant 0 : i32
      %66 = arith.cmpi ne, %65, %c0_i32_40 : i32
      scf.if %66 {
        %c8_i32_47 = arith.constant 8 : i32
        %79 = arith.muli %arg0, %c8_i32_47 : i32
        %80 = arith.addi %79, %63 : i32
        %81 = arith.index_cast %80 : i32 to index
        %82 = memref.load %arg2[%81] : memref<8xi32, #tpu.memory_space<smem>>
        %c0_i32_48 = arith.constant 0 : i32
        %c0_i32_49 = arith.constant 0 : i32
        %83 = tpu.memref_slice %arg7[%82, %c0_i32_49] : memref<16x128xf32, #tpu.memory_space<any>> -> memref<1x128xf32, #tpu.memory_space<any>>
        %84 = tpu.memref_squeeze %83 : memref<1x128xf32, #tpu.memory_space<any>> -> memref<128xf32, #tpu.memory_space<any>>
        %c0_i32_50 = arith.constant 0 : i32
        %85 = tpu.memref_slice %arg13[%63, %c0_i32_50] : memref<8x128xf32, #tpu.memory_space<vmem>> -> memref<1x128xf32, #tpu.memory_space<vmem>>
        %86 = tpu.memref_squeeze %85 : memref<1x128xf32, #tpu.memory_space<vmem>> -> memref<128xf32, #tpu.memory_space<vmem>>
        %87 = tpu.memref_slice %arg14[%c0_i32_48] : memref<1x!tpu.dma_semaphore, #tpu.memory_space<semaphore_mem>> -> memref<1x!tpu.dma_semaphore, #tpu.memory_space<semaphore_mem>>
        %88 = tpu.memref_squeeze %87 : memref<1x!tpu.dma_semaphore, #tpu.memory_space<semaphore_mem>> -> memref<!tpu.dma_semaphore, #tpu.memory_space<semaphore_mem>>
        tpu.enqueue_dma source(%84 : memref<128xf32, #tpu.memory_space<any>>) target(%86 : memref<128xf32, #tpu.memory_space<vmem>>) target_semaphore(%88 : memref<!tpu.dma_semaphore, #tpu.memory_space<semaphore_mem>>)
      } else {
      }
      %c5_i32 = arith.constant 5 : i32
      %67 = arith.addi %0, %c5_i32 : i32
      %c8_i32_41 = arith.constant 8 : i32
      %68 = arith.cmpi slt, %67, %c8_i32_41 : i32
      %69 = arith.extui %68 : i1 to i32
      %c0_i32_42 = arith.constant 0 : i32
      %70 = arith.cmpi ne, %69, %c0_i32_42 : i32
      scf.if %70 {
        %c8_i32_47 = arith.constant 8 : i32
        %79 = arith.muli %arg0, %c8_i32_47 : i32
        %80 = arith.addi %79, %67 : i32
        %81 = arith.index_cast %80 : i32 to index
        %82 = memref.load %arg2[%81] : memref<8xi32, #tpu.memory_space<smem>>
        %c0_i32_48 = arith.constant 0 : i32
        %c0_i32_49 = arith.constant 0 : i32
        %83 = tpu.memref_slice %arg7[%82, %c0_i32_49] : memref<16x128xf32, #tpu.memory_space<any>> -> memref<1x128xf32, #tpu.memory_space<any>>
        %84 = tpu.memref_squeeze %83 : memref<1x128xf32, #tpu.memory_space<any>> -> memref<128xf32, #tpu.memory_space<any>>
        %c0_i32_50 = arith.constant 0 : i32
        %85 = tpu.memref_slice %arg13[%67, %c0_i32_50] : memref<8x128xf32, #tpu.memory_space<vmem>> -> memref<1x128xf32, #tpu.memory_space<vmem>>
        %86 = tpu.memref_squeeze %85 : memref<1x128xf32, #tpu.memory_space<vmem>> -> memref<128xf32, #tpu.memory_space<vmem>>
        %87 = tpu.memref_slice %arg14[%c0_i32_48] : memref<1x!tpu.dma_semaphore, #tpu.memory_space<semaphore_mem>> -> memref<1x!tpu.dma_semaphore, #tpu.memory_space<semaphore_mem>>
        %88 = tpu.memref_squeeze %87 : memref<1x!tpu.dma_semaphore, #tpu.memory_space<semaphore_mem>> -> memref<!tpu.dma_semaphore, #tpu.memory_space<semaphore_mem>>
        tpu.enqueue_dma source(%84 : memref<128xf32, #tpu.memory_space<any>>) target(%86 : memref<128xf32, #tpu.memory_space<vmem>>) target_semaphore(%88 : memref<!tpu.dma_semaphore, #tpu.memory_space<semaphore_mem>>)
      } else {
      }
      %c6_i32 = arith.constant 6 : i32
      %71 = arith.addi %0, %c6_i32 : i32
      %c8_i32_43 = arith.constant 8 : i32
      %72 = arith.cmpi slt, %71, %c8_i32_43 : i32
      %73 = arith.extui %72 : i1 to i32
      %c0_i32_44 = arith.constant 0 : i32
      %74 = arith.cmpi ne, %73, %c0_i32_44 : i32
      scf.if %74 {
        %c8_i32_47 = arith.constant 8 : i32
        %79 = arith.muli %arg0, %c8_i32_47 : i32
        %80 = arith.addi %79, %71 : i32
        %81 = arith.index_cast %80 : i32 to index
        %82 = memref.load %arg2[%81] : memref<8xi32, #tpu.memory_space<smem>>
        %c0_i32_48 = arith.constant 0 : i32
        %c0_i32_49 = arith.constant 0 : i32
        %83 = tpu.memref_slice %arg7[%82, %c0_i32_49] : memref<16x128xf32, #tpu.memory_space<any>> -> memref<1x128xf32, #tpu.memory_space<any>>
        %84 = tpu.memref_squeeze %83 : memref<1x128xf32, #tpu.memory_space<any>> -> memref<128xf32, #tpu.memory_space<any>>
        %c0_i32_50 = arith.constant 0 : i32
        %85 = tpu.memref_slice %arg13[%71, %c0_i32_50] : memref<8x128xf32, #tpu.memory_space<vmem>> -> memref<1x128xf32, #tpu.memory_space<vmem>>
        %86 = tpu.memref_squeeze %85 : memref<1x128xf32, #tpu.memory_space<vmem>> -> memref<128xf32, #tpu.memory_space<vmem>>
        %87 = tpu.memref_slice %arg14[%c0_i32_48] : memref<1x!tpu.dma_semaphore, #tpu.memory_space<semaphore_mem>> -> memref<1x!tpu.dma_semaphore, #tpu.memory_space<semaphore_mem>>
        %88 = tpu.memref_squeeze %87 : memref<1x!tpu.dma_semaphore, #tpu.memory_space<semaphore_mem>> -> memref<!tpu.dma_semaphore, #tpu.memory_space<semaphore_mem>>
        tpu.enqueue_dma source(%84 : memref<128xf32, #tpu.memory_space<any>>) target(%86 : memref<128xf32, #tpu.memory_space<vmem>>) target_semaphore(%88 : memref<!tpu.dma_semaphore, #tpu.memory_space<semaphore_mem>>)
      } else {
      }
      %c7_i32 = arith.constant 7 : i32
      %75 = arith.addi %0, %c7_i32 : i32
      %c8_i32_45 = arith.constant 8 : i32
      %76 = arith.cmpi slt, %75, %c8_i32_45 : i32
      %77 = arith.extui %76 : i1 to i32
      %c0_i32_46 = arith.constant 0 : i32
      %78 = arith.cmpi ne, %77, %c0_i32_46 : i32
      scf.if %78 {
        %c8_i32_47 = arith.constant 8 : i32
        %79 = arith.muli %arg0, %c8_i32_47 : i32
        %80 = arith.addi %79, %75 : i32
        %81 = arith.index_cast %80 : i32 to index
        %82 = memref.load %arg2[%81] : memref<8xi32, #tpu.memory_space<smem>>
        %c0_i32_48 = arith.constant 0 : i32
        %c0_i32_49 = arith.constant 0 : i32
        %83 = tpu.memref_slice %arg7[%82, %c0_i32_49] : memref<16x128xf32, #tpu.memory_space<any>> -> memref<1x128xf32, #tpu.memory_space<any>>
        %84 = tpu.memref_squeeze %83 : memref<1x128xf32, #tpu.memory_space<any>> -> memref<128xf32, #tpu.memory_space<any>>
        %c0_i32_50 = arith.constant 0 : i32
        %85 = tpu.memref_slice %arg13[%75, %c0_i32_50] : memref<8x128xf32, #tpu.memory_space<vmem>> -> memref<1x128xf32, #tpu.memory_space<vmem>>
        %86 = tpu.memref_squeeze %85 : memref<1x128xf32, #tpu.memory_space<vmem>> -> memref<128xf32, #tpu.memory_space<vmem>>
        %87 = tpu.memref_slice %arg14[%c0_i32_48] : memref<1x!tpu.dma_semaphore, #tpu.memory_space<semaphore_mem>> -> memref<1x!tpu.dma_semaphore, #tpu.memory_space<semaphore_mem>>
        %88 = tpu.memref_squeeze %87 : memref<1x!tpu.dma_semaphore, #tpu.memory_space<semaphore_mem>> -> memref<!tpu.dma_semaphore, #tpu.memory_space<semaphore_mem>>
        tpu.enqueue_dma source(%84 : memref<128xf32, #tpu.memory_space<any>>) target(%86 : memref<128xf32, #tpu.memory_space<vmem>>) target_semaphore(%88 : memref<!tpu.dma_semaphore, #tpu.memory_space<semaphore_mem>>)
      } else {
      }
    } else {
    }
    %c0_i32_1 = arith.constant 0 : i32
    %4 = arith.cmpi eq, %arg1, %c0_i32_1 : i32
    %5 = arith.extui %4 : i1 to i32
    %c0_i32_2 = arith.constant 0 : i32
    %6 = arith.cmpi ne, %5, %c0_i32_2 : i32
    scf.if %6 {
      %cst_30 = arith.constant -1.000000e+30 : f32
      %47 = vector.broadcast %cst_30 : f32 to vector<8x1xf32>
      %c0_31 = arith.constant 0 : index
      %c0_32 = arith.constant 0 : index
      %48 = vector.load %arg10[%c0_31, %c0_32] : memref<8x1xf32, #tpu.memory_space<vmem>>, vector<8x1xf32>
      tpu.vector_store %arg10[%c0_31, %c0_32], %47 {strides = array<i32>} : memref<8x1xf32, #tpu.memory_space<vmem>>, vector<8x1xf32>,
      %cst_33 = arith.constant 0.000000e+00 : f32
      %49 = vector.broadcast %cst_33 : f32 to vector<8x1xf32>
      %c0_34 = arith.constant 0 : index
      %c0_35 = arith.constant 0 : index
      %50 = vector.load %arg11[%c0_34, %c0_35] : memref<8x1xf32, #tpu.memory_space<vmem>>, vector<8x1xf32>
      tpu.vector_store %arg11[%c0_34, %c0_35], %49 {strides = array<i32>} : memref<8x1xf32, #tpu.memory_space<vmem>>, vector<8x1xf32>,
      %cst_36 = arith.constant 0.000000e+00 : f32
      %51 = vector.broadcast %cst_36 : f32 to vector<8x1xf32>
      %c0_37 = arith.constant 0 : index
      %c0_38 = arith.constant 0 : index
      %52 = vector.load %arg12[%c0_37, %c0_38] : memref<8x1xf32, #tpu.memory_space<vmem>>, vector<8x1xf32>
      tpu.vector_store %arg12[%c0_37, %c0_38], %51 {strides = array<i32>} : memref<8x1xf32, #tpu.memory_space<vmem>>, vector<8x1xf32>,
    } else {
    }
    %c0 = arith.constant 0 : index
    %c0_3 = arith.constant 0 : index
    %7 = vector.load %arg3[%c0, %c0_3] : memref<8x128xf32, #tpu.memory_space<vmem>>, vector<8x128xf32>
    %c0_4 = arith.constant 0 : index
    %c0_5 = arith.constant 0 : index
    %8 = vector.load %arg5[%c0_4, %c0_5] : memref<128x128xf32, #tpu.memory_space<vmem>>, vector<128x128xf32>
    %cst = arith.constant dense<0.000000e+00> : vector<8x128xf32>
    %9 = tpu.matmul %7, %8, %cst {dimension_numbers = #tpu.dot_dimension_numbers<[1], [1], [0], [0], [0, 0, 1, 0], [], []>} : vector<8x128xf32>, vector<128x128xf32>, vector<8x128xf32> -> vector<8x128xf32>
    %c0_6 = arith.constant 0 : index
    %c0_7 = arith.constant 0 : index
    %10 = vector.load %arg6[%c0_6, %c0_7] : memref<1x128xf32, #tpu.memory_space<vmem>>, vector<1x128xf32>
    %11 = vector.broadcast %10 : vector<1x128xf32> to vector<8x128xf32>
    %12 = arith.addf %9, %11 : vector<8x128xf32>
    %c128_i32 = arith.constant 128 : i32
    %13 = arith.muli %arg1, %c128_i32 : i32
    %14 = tpu.iota {dimensions = array<i32: 1>} : vector<8x128xi32>
    %15 = vector.broadcast %13 : i32 to vector<8x128xi32>
    %16 = arith.addi %15, %14 : vector<8x128xi32>
    %c0_8 = arith.constant 0 : index
    %c0_9 = arith.constant 0 : index
    %17 = vector.load %arg4[%c0_8, %c0_9] : memref<8x1xi32, #tpu.memory_space<vmem>>, vector<8x1xi32>
    %c0_10 = arith.constant 0 : index
    %c0_11 = arith.constant 0 : index
    %18 = vector.load %arg12[%c0_10, %c0_11] : memref<8x1xf32, #tpu.memory_space<vmem>>, vector<8x1xf32>
    %19 = vector.broadcast %17 : vector<8x1xi32> to vector<8x128xi32>
    %20 = arith.cmpi eq, %16, %19 : vector<8x128xi32>
    %cst_12 = arith.constant 0.000000e+00 : f32
    %21 = vector.broadcast %cst_12 : f32 to vector<8x128xf32>
    %22 = arith.select %20, %12, %21 : vector<8x128xi1>, vector<8x128xf32>
    %cst_13 = arith.constant dense<0.000000e+00> : vector<8xf32>
    %23 = vector.multi_reduction <add>, %22, %cst_13 [1] : vector<8x128xf32> to vector<8xf32>
    %24 = vector.shape_cast %23 : vector<8xf32> to vector<8x1xf32>
    %25 = arith.addf %18, %24 : vector<8x1xf32>
    %c0_14 = arith.constant 0 : index
    %c0_15 = arith.constant 0 : index
    %26 = vector.load %arg12[%c0_14, %c0_15] : memref<8x1xf32, #tpu.memory_space<vmem>>, vector<8x1xf32>
    tpu.vector_store %arg12[%c0_14, %c0_15], %25 {strides = array<i32>} : memref<8x1xf32, #tpu.memory_space<vmem>>, vector<8x1xf32>,
    %c0_16 = arith.constant 0 : index
    %c0_17 = arith.constant 0 : index
    %27 = vector.load %arg10[%c0_16, %c0_17] : memref<8x1xf32, #tpu.memory_space<vmem>>, vector<8x1xf32>
    %cst_18 = arith.constant dense<0xFF800000> : vector<8xf32>
    %28 = vector.multi_reduction <maximumf>, %12, %cst_18 [1] : vector<8x128xf32> to vector<8xf32>
    %29 = vector.shape_cast %28 : vector<8xf32> to vector<8x1xf32>
    %30 = arith.maximumf %27, %29 : vector<8x1xf32>
    %c0_19 = arith.constant 0 : index
    %c0_20 = arith.constant 0 : index
    %31 = vector.load %arg10[%c0_19, %c0_20] : memref<8x1xf32, #tpu.memory_space<vmem>>, vector<8x1xf32>
    %32 = arith.subf %31, %30 : vector<8x1xf32>
    %33 = math.exp %32 : vector<8x1xf32>
    %c0_21 = arith.constant 0 : index
    %c0_22 = arith.constant 0 : index
    %34 = vector.load %arg11[%c0_21, %c0_22] : memref<8x1xf32, #tpu.memory_space<vmem>>, vector<8x1xf32>
    %35 = arith.mulf %33, %34 : vector<8x1xf32>
    %36 = vector.broadcast %30 : vector<8x1xf32> to vector<8x128xf32>
    %37 = arith.subf %12, %36 : vector<8x128xf32>
    %38 = math.exp %37 : vector<8x128xf32>
    %cst_23 = arith.constant dense<0.000000e+00> : vector<8xf32>
    %39 = vector.multi_reduction <add>, %38, %cst_23 [1] : vector<8x128xf32> to vector<8xf32>
    %40 = vector.shape_cast %39 : vector<8xf32> to vector<8x1xf32>
    %41 = arith.addf %35, %40 : vector<8x1xf32>
    %c0_24 = arith.constant 0 : index
    %c0_25 = arith.constant 0 : index
    %42 = vector.load %arg11[%c0_24, %c0_25] : memref<8x1xf32, #tpu.memory_space<vmem>>, vector<8x1xf32>
    tpu.vector_store %arg11[%c0_24, %c0_25], %41 {strides = array<i32>} : memref<8x1xf32, #tpu.memory_space<vmem>>, vector<8x1xf32>,
    %c0_26 = arith.constant 0 : index
    %c0_27 = arith.constant 0 : index
    %43 = vector.load %arg10[%c0_26, %c0_27] : memref<8x1xf32, #tpu.memory_space<vmem>>, vector<8x1xf32>
    tpu.vector_store %arg10[%c0_26, %c0_27], %30 {strides = array<i32>} : memref<8x1xf32, #tpu.memory_space<vmem>>, vector<8x1xf32>,
    %c0_i32_28 = arith.constant 0 : i32
    %44 = arith.cmpi eq, %arg1, %c0_i32_28 : i32
    %45 = arith.extui %44 : i1 to i32
    %c0_i32_29 = arith.constant 0 : i32
    %46 = arith.cmpi ne, %45, %c0_i32_29 : i32
    scf.if %46 {
      %c0_i32_30 = arith.constant 0 : i32
      %47 = tpu.memref_slice %arg14[%c0_i32_30] : memref<1x!tpu.dma_semaphore, #tpu.memory_space<semaphore_mem>> -> memref<1x!tpu.dma_semaphore, #tpu.memory_space<semaphore_mem>>
      %48 = tpu.memref_squeeze %47 : memref<1x!tpu.dma_semaphore, #tpu.memory_space<semaphore_mem>> -> memref<!tpu.dma_semaphore, #tpu.memory_space<semaphore_mem>>
      tpu.wait_dma2 semaphore(%48 : memref<!tpu.dma_semaphore, #tpu.memory_space<semaphore_mem>>) src(%arg13 : memref<8x128xf32, #tpu.memory_space<vmem>>) dst(%arg13 : memref<8x128xf32, #tpu.memory_space<vmem>>)
      %c0_31 = arith.constant 0 : index
      %c0_32 = arith.constant 0 : index
      %49 = vector.load %arg10[%c0_31, %c0_32] : memref<8x1xf32, #tpu.memory_space<vmem>>, vector<8x1xf32>
      %c0_33 = arith.constant 0 : index
      %c0_34 = arith.constant 0 : index
      %50 = vector.load %arg11[%c0_33, %c0_34] : memref<8x1xf32, #tpu.memory_space<vmem>>, vector<8x1xf32>
      %51 = math.log %50 : vector<8x1xf32>
      %52 = arith.addf %49, %51 : vector<8x1xf32>
      %c0_35 = arith.constant 0 : index
      %c0_36 = arith.constant 0 : index
      %53 = vector.load %arg12[%c0_35, %c0_36] : memref<8x1xf32, #tpu.memory_space<vmem>>, vector<8x1xf32>
      %54 = arith.subf %52, %53 : vector<8x1xf32>
      %c0_37 = arith.constant 0 : index
      %c0_38 = arith.constant 0 : index
      %55 = vector.load %arg13[%c0_37, %c0_38] : memref<8x128xf32, #tpu.memory_space<vmem>>, vector<8x128xf32>
      %56 = arith.subf %7, %55 : vector<8x128xf32>
      %57 = arith.mulf %56, %56 : vector<8x128xf32>
      %cst_39 = arith.constant dense<0.000000e+00> : vector<8xf32>
      %58 = vector.multi_reduction <add>, %57, %cst_39 [1] : vector<8x128xf32> to vector<8xf32>
      %59 = vector.shape_cast %58 : vector<8xf32> to vector<8x1xf32>
      %cst_40 = arith.constant 5.000000e-01 : f32
      %60 = vector.broadcast %cst_40 : f32 to vector<8x1xf32>
      %61 = arith.mulf %60, %59 : vector<8x1xf32>
      %c8_i32_41 = arith.constant 8 : i32
      %62 = arith.muli %arg0, %c8_i32_41 : i32
      %63 = tpu.iota {dimensions = array<i32: 0>} : vector<8x1xi32>
      %64 = vector.broadcast %62 : i32 to vector<8x1xi32>
      %65 = arith.addi %64, %63 : vector<8x1xi32>
      %c8_i32_42 = arith.constant 8 : i32
      %66 = vector.broadcast %c8_i32_42 : i32 to vector<8x1xi32>
      %67 = arith.cmpi slt, %65, %66 : vector<8x1xi32>
      %cst_43 = arith.constant 0.000000e+00 : f32
      %68 = vector.broadcast %cst_43 : f32 to vector<8x1xf32>
      %69 = arith.select %67, %54, %68 : vector<8x1xi1>, vector<8x1xf32>
      %70 = vector.shape_cast %69 : vector<8x1xf32> to vector<1x8x1xf32>
      %cst_44 = arith.constant dense<0.000000e+00> : vector<1xf32>
      %71 = vector.multi_reduction <add>, %70, %cst_44 [1, 2] : vector<1x8x1xf32> to vector<1xf32>
      %72 = vector.shape_cast %71 : vector<1xf32> to vector<1x1x1xf32>
      %73 = vector.extract %72[0, 0, 0] : f32 from vector<1x1x1xf32>
      %74 = vector.broadcast %73 : f32 to vector<1x1x1xf32>
      %c0_45 = arith.constant 0 : index
      %c0_46 = arith.constant 0 : index
      %c0_47 = arith.constant 0 : index
      %75 = vector.load %arg8[%c0_45, %c0_46, %c0_47] : memref<1x1x1xf32, #tpu.memory_space<vmem>>, vector<1x1x1xf32>
      tpu.vector_store %arg8[%c0_45, %c0_46, %c0_47], %74 {strides = array<i32>} : memref<1x1x1xf32, #tpu.memory_space<vmem>>, vector<1x1x1xf32>,
      %cst_48 = arith.constant 0.000000e+00 : f32
      %76 = vector.broadcast %cst_48 : f32 to vector<8x1xf32>
      %77 = arith.select %67, %61, %76 : vector<8x1xi1>, vector<8x1xf32>
      %78 = vector.shape_cast %77 : vector<8x1xf32> to vector<1x8x1xf32>
      %cst_49 = arith.constant dense<0.000000e+00> : vector<1xf32>
      %79 = vector.multi_reduction <add>, %78, %cst_49 [1, 2] : vector<1x8x1xf32> to vector<1xf32>
      %80 = vector.shape_cast %79 : vector<1xf32> to vector<1x1x1xf32>
      %81 = vector.extract %80[0, 0, 0] : f32 from vector<1x1x1xf32>
      %82 = vector.broadcast %81 : f32 to vector<1x1x1xf32>
      %c0_50 = arith.constant 0 : index
      %c0_51 = arith.constant 0 : index
      %c0_52 = arith.constant 0 : index
      %83 = vector.load %arg9[%c0_50, %c0_51, %c0_52] : memref<1x1x1xf32, #tpu.memory_space<vmem>>, vector<1x1x1xf32>
      tpu.vector_store %arg9[%c0_50, %c0_51, %c0_52], %82 {strides = array<i32>} : memref<1x1x1xf32, #tpu.memory_space<vmem>>, vector<1x1x1xf32>,
    } else {
    }
    return
  }
  func.func @transform_0(%arg0: i32, %arg1: i32, %arg2: memref<8xi32, #tpu.memory_space<smem>>) -> (i32, i32) {
    %c0_i32 = arith.constant 0 : i32
    %c0_i32_0 = arith.constant 0 : i32
    return %arg0, %c0_i32 : i32, i32
  }
  func.func @transform_1(%arg0: i32, %arg1: i32, %arg2: memref<8xi32, #tpu.memory_space<smem>>) -> (i32, i32) {
    %c0_i32 = arith.constant 0 : i32
    %c0_i32_0 = arith.constant 0 : i32
    return %arg0, %c0_i32 : i32, i32
  }
  func.func @transform_2(%arg0: i32, %arg1: i32, %arg2: memref<8xi32, #tpu.memory_space<smem>>) -> (i32, i32) {
    %c0_i32 = arith.constant 0 : i32
    %c0_i32_0 = arith.constant 0 : i32
    return %arg1, %c0_i32 : i32, i32
  }
  func.func @transform_3(%arg0: i32, %arg1: i32, %arg2: memref<8xi32, #tpu.memory_space<smem>>) -> (i32, i32) {
    %c0_i32 = arith.constant 0 : i32
    %c0_i32_0 = arith.constant 0 : i32
    return %c0_i32, %arg1 : i32, i32
  }
  func.func @transform_5(%arg0: i32, %arg1: i32, %arg2: memref<8xi32, #tpu.memory_space<smem>>) -> (i32, i32, i32) {
    %c0_i32 = arith.constant 0 : i32
    %c0_i32_0 = arith.constant 0 : i32
    %c0_i32_1 = arith.constant 0 : i32
    return %arg0, %c0_i32, %c0_i32_0 : i32, i32, i32
  }
  func.func @transform_6(%arg0: i32, %arg1: i32, %arg2: memref<8xi32, #tpu.memory_space<smem>>) -> (i32, i32, i32) {
    %c0_i32 = arith.constant 0 : i32
    %c0_i32_0 = arith.constant 0 : i32
    %c0_i32_1 = arith.constant 0 : i32
    return %arg0, %c0_i32, %c0_i32_0 : i32, i32, i32
  }
}

</mosaic_0001>

<bundles_post_ra>
// kernel: tpu_custom_call.1
= control target key start
LH: loop header
LB: loop body
LE: loop exit
PB: predicated region body
PF: predicated region fallthrough
CT: control target
= control target key end

     0   :  { %s742_s27 = smov [#allocation8]   ;;  %s935_s0 = inlined_call_operand.vmem [shape: s32[8], index: 0, kind: input, shape index: {}]   ;;  %s936_s1 = inlined_call_operand.vmem [shape: f32[8,128], index: 1, kind: input, shape index: {}]   ;;  %s937_s2 = inlined_call_operand.vmem [shape: s32[8,1], index: 2, kind: input, shape index: {}]   ;;  %s938_s3 = inlined_call_operand.hbm [shape: f32[128,128], index: 3, kind: input, shape index: {}]   ;;  %s939_s4 = inlined_call_operand.vmem [shape: f32[1,128], index: 4, kind: input, shape index: {}]   ;;  %s940_s5 = inlined_call_operand.hbm [shape: f32[16,128], index: 5, kind: input, shape index: {}]   ;;  %s941_s6 = inlined_call_operand.hbm [shape: f32[1,1,1], index: 6, kind: output, shape index: {0}]   ;;  %s942_s7 = inlined_call_operand.hbm [shape: f32[1,1,1], index: 7, kind: output, shape index: {1}]  }
   0x1   :  { %s14_s26 = sshll.u32 %s935_s0, 4  ;;  %s15_s26 = int_to_ptr.vmem [resolvable:$true] %s14_s26 }
   0x2   :  { %17 = dma.vmem_to_smem %s15_s26, 16, %s742_s27, [#allocation7] }
   0x3   :  { %732 = dma.done.wait [#allocation7], 16 }
   0x4   :  { %733 = vsyncadd [#allocation7], 4294967280 }
   0x5   :  { %20 = sfence }
   0x6   :  { %21 = vsyncpa [#allocation10], 0 }
   0x7   :  { %22 = vsyncpa [#allocation11], 0 }
   0x8   :  { %23 = vsyncpa [#allocation14], 0  ;;  %s32_s30 = sshll.u32 %s938_s3, 4  ;;  %s743_s8 = smov [#allocation9]   ;;  %s33_s30 = int_to_ptr.hbm [resolvable:$true] %s32_s30 }
   0x9   :  { %s34_s9 = sshll.u32 %s743_s8, 4  ;;  %s744_s10 = smov 128   ;;  %s35_s9 = int_to_ptr.vmem [resolvable:$true] %s34_s9 }
   0xa   :  { %s745_s11 = smov 8  }
   0xb   :  { %40 = dma.hbm_to_vmem [thread:$0]  %s33_s30, 2048, %s35_s9, [#allocation10], %s744_s10, %s744_s10, %s745_s11  }
   0xc   :  { %734 = dma.done.wait [#allocation10], 2048  }
   0xd   :  { %735 = vsyncadd [#allocation10], 4294965248  ;;  %v248_v0 = vld [vmem:[#allocation9 + $0x78] sm:$0xff]  ;;  %v247_v1 = vld [vmem:[#allocation9 + $0x70] sm:$0xff]  ;;  %v746_v10 = vmov 0   ;;  %vm228_vm0 = vcmask 7168   ;;  %v274_v20 = vlaneseq }
   0xe   :  { %253 = vmatpush.xpose.msra.mxu0 %v248_v0  ;;  %v246_v2 = vld [vmem:[#allocation9 + $0x68] sm:$0xff]  ;;  %v245_v3 = vld [vmem:[#allocation9 + $0x60] sm:$0xff]  ;;  %v244_v4 = vld [vmem:[#allocation9 + $0x58] sm:$0xff]  ;;  %448 = vset.pattern.permute.xlu1 %v746_v10  ;;  %v747_v19 = vmov -1e+30   ;;  %v748_v27 = vmov 0.0  }
   0xf   :  { %v243_v5 = vld [vmem:[#allocation9 + $0x50] sm:$0xff]  ;;  %v242_v6 = vld [vmem:[#allocation9 + $0x48] sm:$0xff]  ;;  %v241_v7 = vld [vmem:[#allocation9 + $0x40] sm:$0xff]  ;;  %447 = vset.pattern.permute.xlu0 %v746_v10  ;;  %229 = vst.msk [vmem:[#allocation2] sm:$0xff] %vm228_vm0, %v747_v19  ;;  %v275_v21 = vand.u32 127, %v274_v20  ;;  %s418_s16 = sld [smem:[#allocation8 + $0x1]] }
  0x10   :  { %v240_v8 = vld [vmem:[#allocation9 + $0x38] sm:$0xff]  ;;  %v278_v9 = vld [vmem:[%s937_s2] sm:$0xff]  ;;  %v239_v11 = vld [vmem:[#allocation9 + $0x30] sm:$0xff]  ;;  %231 = vst.msk [vmem:[#allocation4] sm:$0xff] %vm228_vm0, %v748_v27  ;;  %s750_s17 = smov [#allocation5 + $0x1]   ;;  %s840_s19 = sld [smem:[#allocation8 + $0x2]] }
  0x11   :  { %281 = vperm.xlu1 %448, %v278_v9   ;;  %v238_v12 = vld [vmem:[#allocation9 + $0x28] sm:$0xff]  ;;  %v237_v13 = vld [vmem:[#allocation9 + $0x20] sm:$0xff]  ;;  %v236_v14 = vld [vmem:[#allocation9 + $0x18] sm:$0xff]  ;;  %230 = vst.msk [vmem:[#allocation3] sm:$0xff] %vm228_vm0, %v748_v27  ;;  %s838_s18 = sshll.u32 %s750_s17, 4  ;;  %s751_s20 = smov [#allocation5 + $0x2]   ;;  %s89_s18 = int_to_ptr.vmem [resolvable:$true] %s838_s18 }
  0x12   :  { %254 = vmatpush.xpose.msra.mxu0 %v247_v1  ;;  %v235_v15 = vld [vmem:[#allocation9 + $0x10] sm:$0xff]  ;;  %v234_v16 = vld [vmem:[#allocation9 + $0x8] sm:$0xff]  ;;  %v233_v17 = vld [vmem:[#allocation9] sm:$0xff]  ;;  %s843_s21 = sshll.u32 %s751_s20, 4  ;;  %s845_s22 = sld [smem:[#allocation8 + $0x3]]  ;;  %s111_s21 = int_to_ptr.vmem [resolvable:$true] %s843_s21 }
  0x13   :  { %v811_v18 = vld [vmem:[%s936_s1] sm:$0xff]  ;;  %s54_s1 = sld [smem:[#allocation8]]  ;;  %s857_s0 = scalar_lea.hbm %s940_s5, 16 }
  0x14   :  { %v449_v22 = vld [vmem:[%s939_s4] ss:$0 sm:$0xff]  ;;  %s749_s4 = smov [#allocation5]  }
  0x15   :  { %s829_s15 = sshll.u32 %s749_s4, 4  ;;  %s77_s29 = scalar_lea.hbm %s940_s5, %s418_s16  ;;  %s67_s15 = int_to_ptr.vmem [resolvable:$true] %s829_s15 }
  0x16   :  { %255 = vmatpush.xpose.msra.mxu0 %v246_v2  ;;  %v824_v28 = vld [vmem:[#allocation2] sm:$0xff]  ;;  %s86_s30 = sshll.u32 %s77_s29, 4  ;;  %s87_s30 = int_to_ptr.hbm [resolvable:$true] %s86_s30 }
  0x17   :  { %v279_v29 = vld [vmem:[#allocation4] sm:$0xff] }
  0x19   :  { %s55_s25 = scalar_lea.hbm %s940_s5, %s54_s1 }
  0x1a   :  { %256 = vmatpush.xpose.msra.mxu0 %v245_v3  ;;  %s64_s26 = sshll.u32 %s55_s25, 4  ;;  %s65_s26 = int_to_ptr.hbm [resolvable:$true] %s64_s26 }
  0x1b   :  { %s492_s8 = sshra.s32 %s65_s26, 4  ;;  %s493_s8 = int_to_ptr.hbm [resolvable:$true] %s492_s8 }
  0x1c   :  { %s494_s9 = scalar_lea.hbm %s493_s8, 1  ;;  %p497_p1 = scmp.lt.s32.totalorder %s493_s8, %s940_s5 }
  0x1d   :  { %p495_p0 = scmp.ne.s32.totalorder %s493_s8, %s494_s9  ;;  %p498_p2 = scmp.lt.s32.totalorder %s857_s0, %s494_s9 }
  0x1e   :  { %257 = vmatpush.xpose.msra.mxu0 %v244_v4 }
  0x1f   :  { %p499_p3 = por %p498_p2, %p497_p1 }
  0x21   :  { %p500_p4 = pnand %p499_p3, %p495_p0 }
  0x22   :  { %258 = vmatpush.xpose.msra.mxu0 %v243_v5 }
  0x26   :  { %259 = vmatpush.xpose.msra.mxu0 %v242_v6 }
  0x2a   :  { %260 = vmatpush.xpose.msra.mxu0 %v241_v7 }
  0x2e   :  { %261 = vmatpush.xpose.msra.mxu0 %v240_v8 }
  0x32   :  { %262 = vmatpush.xpose.msra.mxu0 %v239_v11 }
  0x36   :  { %263 = vmatpush.xpose.msra.mxu0 %v238_v12 }
  0x3a   :  { %264 = vmatpush.xpose.msra.mxu0 %v237_v13 }
  0x3e   :  { %265 = vmatpush.xpose.msra.mxu0 %v236_v14 }
  0x42   :  { %266 = vmatpush.xpose.msra.mxu0 %v235_v15 }
  0x46   :  { %267 = vmatpush.xpose.msra.mxu0 %v234_v16 }
  0x4a   :  { %268 = vmatpush.xpose.msra.mxu0 %v233_v17 }
  0x4d   :  { %269 = vmatmul.f32.vlgmr.msra.gmra.mxu0 %v811_v18 }
  0x83   :  { %v282_v23 = vpop.permute.xlu1 %281 }
  0x84   :  { %vm283_vm1 = vcmp.eq.s32.totalorder %v275_v21, %v282_v23 }
  0xca   :  { %v270_v24 = vpop.f32.mrf.mxu0 }
  0xcb   :  { %v818_v25 = vadd.f32 %v449_v22, %v270_v24 }
  0xcd   :  { %291 = vmax.xlane.f32.xlu0 %v818_v25  ;;  %v284_v26 = vsel %vm283_vm1, %v818_v25, 0.0 }
  0xce   :  { %285 = vadd.xlane.f32.xlu1 %v284_v26 }
 0x140   :  { %v292_v30 = vpop.xlane.xlu0 %291 }
 0x141   :  { %v827_v31 = vmax.f32 %v824_v28, %v292_v30  ;;  %v286_v32 = vpop.xlane.xlu1 %285 }
 0x142   :  { %v287_v33 = vadd.f32 %v286_v32, %v279_v29 }
 0x143   :  { %v294_v34 = vsub.f32 %v824_v28, %v827_v31  ;;  %311 = vst.msk [vmem:[#allocation2] sm:$0xff] %vm228_vm0, %v827_v31  ;;  %301 = vperm.xlu0 %447, %v827_v31  }
 0x144   :  { %289 = vst.msk [vmem:[#allocation4] sm:$0xff] %vm228_vm0, %v287_v33 }
 0x145   :  { %503 = shalt.err (!%p500_p4)  }
 0x146   :  { %69 = dma.hbm_to_vmem [thread:$0]  %s65_s26, 16, %s67_s15, [#allocation6] }
 0x147   :  { %s99_s14 = scalar_lea.hbm %s940_s5, %s840_s19  ;;  %s516_s1 = sshra.s32 %s87_s30, 4  ;;  %s517_s1 = int_to_ptr.hbm [resolvable:$true] %s516_s1 }
 0x148   :  { %s518_s4 = scalar_lea.hbm %s517_s1, 1  ;;  %p521_p6 = scmp.lt.s32.totalorder %s517_s1, %s940_s5 }
 0x149   :  { %p519_p5 = scmp.ne.s32.totalorder %s517_s1, %s518_s4  ;;  %p522_p7 = scmp.lt.s32.totalorder %s857_s0, %s518_s4 }
 0x14b   :  { %p523_p8 = por %p522_p7, %p521_p6 }
 0x14d   :  { %p524_p9 = pnand %p523_p8, %p519_p5 }
 0x14f   :  { %527 = shalt.err (!%p524_p9)  }
 0x150   :  { %91 = dma.hbm_to_vmem [thread:$0]  %s87_s30, 16, %s89_s18, [#allocation6] }
 0x151   :  { %s108_s15 = sshll.u32 %s99_s14, 4  ;;  %s121_s23 = scalar_lea.hbm %s940_s5, %s845_s22  ;;  %s109_s15 = int_to_ptr.hbm [resolvable:$true] %s108_s15 }
 0x152   :  { %s130_s24 = sshll.u32 %s121_s23, 4  ;;  %s540_s25 = sshra.s32 %s109_s15, 4  ;;  %s541_s25 = int_to_ptr.hbm [resolvable:$true] %s540_s25  ;;  %s131_s24 = int_to_ptr.hbm [resolvable:$true] %s130_s24 }
 0x153   :  { %s542_s26 = scalar_lea.hbm %s541_s25, 1  ;;  %p545_p11 = scmp.lt.s32.totalorder %s541_s25, %s940_s5 }
 0x154   :  { %p543_p10 = scmp.ne.s32.totalorder %s541_s25, %s542_s26  ;;  %p546_p12 = scmp.lt.s32.totalorder %s857_s0, %s542_s26 }
 0x156   :  { %p547_p13 = por %p546_p12, %p545_p11 }
 0x158   :  { %p548_p0 = pnand %p547_p13, %p543_p10 }
 0x15a   :  { %551 = shalt.err (!%p548_p0)  }
 0x15b   :  { %113 = dma.hbm_to_vmem [thread:$0]  %s109_s15, 16, %s111_s21, [#allocation6] }
 0x15c   :  { %s752_s18 = smov [#allocation5 + $0x3]   ;;  %s564_s29 = sshra.s32 %s131_s24, 4  ;;  %s565_s29 = int_to_ptr.hbm [resolvable:$true] %s564_s29 }
 0x15d   :  { %s132_s22 = sshll.u32 %s752_s18, 4  ;;  %s566_s30 = scalar_lea.hbm %s565_s29, 1  ;;  %s133_s22 = int_to_ptr.vmem [resolvable:$true] %s132_s22 }
 0x15e   :  { %p567_p1 = scmp.ne.s32.totalorder %s565_s29, %s566_s30  ;;  %p569_p2 = scmp.lt.s32.totalorder %s565_s29, %s940_s5 }
 0x15f   :  { %p570_p3 = scmp.lt.s32.totalorder %s857_s0, %s566_s30 }
 0x161   :  { %p571_p4 = por %p570_p3, %p569_p2 }
 0x163   :  { %p572_p5 = pnand %p571_p4, %p567_p1 }
 0x165   :  { %575 = shalt.err (!%p572_p5)  }
 0x166   :  { %135 = dma.hbm_to_vmem [thread:$0]  %s131_s24, 16, %s133_s22, [#allocation6] }
 0x167   :  { %s421_s10 = sld [smem:[#allocation8 + $0x4]]  ;;  %s753_s1 = smov [#allocation5 + $0x4]  }
 0x168   :  { %s422_s21 = sld [smem:[#allocation8 + $0x5]]  ;;  %s154_s4 = sshll.u32 %s753_s1, 4  ;;  %s155_s4 = int_to_ptr.vmem [resolvable:$true] %s154_s4 }
 0x169   :  { %s887_s11 = sld [smem:[#allocation8 + $0x6]] }
 0x16a   :  { %s889_s3 = sld [smem:[#allocation8 + $0x7]] }
 0x16d   :  { %s143_s13 = scalar_lea.hbm %s940_s5, %s421_s10 }
 0x16e   :  { %s152_s14 = sshll.u32 %s143_s13, 4  ;;  %s153_s14 = int_to_ptr.hbm [resolvable:$true] %s152_s14 }
 0x16f   :  { %s588_s16 = sshra.s32 %s153_s14, 4  ;;  %s589_s16 = int_to_ptr.hbm [resolvable:$true] %s588_s16 }
 0x170   :  { %s590_s17 = scalar_lea.hbm %s589_s16, 1  ;;  %p593_p7 = scmp.lt.s32.totalorder %s589_s16, %s940_s5 }
 0x171   :  { %p591_p6 = scmp.ne.s32.totalorder %s589_s16, %s590_s17  ;;  %p594_p8 = scmp.lt.s32.totalorder %s857_s0, %s590_s17 }
 0x173   :  { %p595_p9 = por %p594_p8, %p593_p7 }
 0x175   :  { %p596_p10 = pnand %p595_p9, %p591_p6 }
 0x177   :  { %599 = shalt.err (!%p596_p10)  }
 0x178   :  { %157 = dma.hbm_to_vmem [thread:$0]  %s153_s14, 16, %s155_s4, [#allocation6] }
 0x179   :  { %s165_s24 = scalar_lea.hbm %s940_s5, %s422_s21  ;;  %s754_s26 = smov [#allocation5 + $0x5]  }
 0x17a   :  { %s174_s25 = sshll.u32 %s165_s24, 4  ;;  %s176_s27 = sshll.u32 %s754_s26, 4  ;;  %s175_s25 = int_to_ptr.hbm [resolvable:$true] %s174_s25  ;;  %s177_s27 = int_to_ptr.vmem [resolvable:$true] %s176_s27 }
 0x17b   :  { %s612_s28 = sshra.s32 %s175_s25, 4  ;;  %s613_s28 = int_to_ptr.hbm [resolvable:$true] %s612_s28 }
 0x17c   :  { %s614_s18 = scalar_lea.hbm %s613_s28, 1  ;;  %p617_p12 = scmp.lt.s32.totalorder %s613_s28, %s940_s5 }
 0x17d   :  { %p615_p11 = scmp.ne.s32.totalorder %s613_s28, %s614_s18  ;;  %p618_p13 = scmp.lt.s32.totalorder %s857_s0, %s614_s18 }
 0x17f   :  { %p619_p0 = por %p618_p13, %p617_p12 }
 0x181   :  { %p620_p1 = pnand %p619_p0, %p615_p11 }
 0x1b5   :  { %v302_v35 = vpop.permute.xlu0 %301 }
 0x1b6   :  { %v304_v36 = vsub.f32 %v818_v25, %v302_v35 }
 0x1b8   :  { %v305_v37 = vmul.f32 1.442695, %v304_v36 }
 0x1b9   :  { %623 = shalt.err (!%p620_p1)  }
 0x1ba   :  { %179 = dma.hbm_to_vmem [thread:$0]  %s175_s25, 16, %s177_s27, [#allocation6]  ;;  %450 = vpow2.f32 %v305_v37 }
 0x1bb   :  { %s187_s9 = scalar_lea.hbm %s940_s5, %s887_s11  ;;  %s755_s21 = smov [#allocation5 + $0x6]  }
 0x1bc   :  { %s196_s10 = sshll.u32 %s187_s9, 4  ;;  %s198_s2 = sshll.u32 %s755_s21, 4  ;;  %s197_s10 = int_to_ptr.hbm [resolvable:$true] %s196_s10  ;;  %s199_s2 = int_to_ptr.vmem [resolvable:$true] %s198_s2 }
 0x1bd   :  { %s636_s12 = sshra.s32 %s197_s10, 4  ;;  %s637_s12 = int_to_ptr.hbm [resolvable:$true] %s636_s12 }
 0x1be   :  { %s638_s13 = scalar_lea.hbm %s637_s12, 1  ;;  %p641_p3 = scmp.lt.s32.totalorder %s637_s12, %s940_s5 }
 0x1bf   :  { %p639_p2 = scmp.ne.s32.totalorder %s637_s12, %s638_s13  ;;  %p642_p4 = scmp.lt.s32.totalorder %s857_s0, %s638_s13 }
 0x1c1   :  { %p643_p5 = por %p642_p4, %p641_p3 }
 0x1c3   :  { %p644_p6 = pnand %p643_p5, %p639_p2 }
 0x1c5   :  { %647 = shalt.err (!%p644_p6)  }
 0x1c6   :  { %201 = dma.hbm_to_vmem [thread:$0]  %s197_s10, 16, %s199_s2, [#allocation6]  ;;  %v451_v38 = vpop.eup %450 }
 0x1c7   :  { %s209_s16 = scalar_lea.hbm %s940_s5, %s889_s3  ;;  %s756_s15 = smov [#allocation5 + $0x7]  }
 0x1c8   :  { %s218_s17 = sshll.u32 %s209_s16, 4  ;;  %s220_s20 = sshll.u32 %s756_s15, 4  ;;  %s219_s17 = int_to_ptr.hbm [resolvable:$true] %s218_s17  ;;  %s221_s20 = int_to_ptr.vmem [resolvable:$true] %s220_s20 }
 0x1c9   :  { %s660_s19 = sshra.s32 %s219_s17, 4  ;;  %s661_s19 = int_to_ptr.hbm [resolvable:$true] %s660_s19 }
 0x1ca   :  { %s662_s23 = scalar_lea.hbm %s661_s19, 1  ;;  %p665_p8 = scmp.lt.s32.totalorder %s661_s19, %s940_s5 }
 0x1cb   :  { %p663_p7 = scmp.ne.s32.totalorder %s661_s19, %s662_s23  ;;  %p666_p9 = scmp.lt.s32.totalorder %s857_s0, %s662_s23 }
 0x1cd   :  { %p667_p10 = por %p666_p9, %p665_p8 }
 0x1cf   :  { %p668_p11 = pnand %p667_p10, %p663_p7 }
 0x1d1   :  { %671 = shalt.err (!%p668_p11)  }
 0x1d2   :  { %223 = dma.hbm_to_vmem [thread:$0]  %s219_s17, 16, %s221_s20, [#allocation6]  ;;  %307 = vadd.xlane.f32.xlu2 %v451_v38  ;;  %v295_v39 = vmul.f32 1.442695, %v294_v34  ;;  %v297_v41 = vld [vmem:[#allocation3] sm:$0xff] }
 0x1d4   :  { %452 = vpow2.f32 %v295_v39 }
 0x1da   :  { %v453_v40 = vpop.eup %452 }
 0x1db   :  { %v298_v42 = vmul.f32 %v453_v40, %v297_v41 }
 0x245   :  { %v308_v43 = vpop.xlane.xlu2 %307 }
 0x246   :  { %v309_v44 = vadd.f32 %v308_v43, %v298_v42 }
 0x248   :  { %310 = vst.msk [vmem:[#allocation3] sm:$0xff] %vm228_vm0, %v309_v44 }
 0x249   :  { %736 = dma.done.wait [#allocation6], 128 }
 0x24a   :  { %737 = vsyncadd [#allocation6], 4294967168  ;;  %v325_v45 = vld [vmem:[#allocation5] sm:$0xff]  ;;  %v318_v50 = vld [vmem:[#allocation2] sm:$0xff]  ;;  %s757_s5 = smov [#allocation12]   ;;  %s371_s27 = sshll.u32 %s941_s6, 4  ;;  %s372_s27 = int_to_ptr.hbm [resolvable:$true] %s371_s27 }
 0x24b   :  { %v326_v47 = vsub.f32 %v811_v18, %v325_v45  ;;  %v323_v52 = vld [vmem:[#allocation4] sm:$0xff]  ;;  %s369_s0 = sshll.u32 %s757_s5, 4  ;;  %vm349_vm2 = vcmask 0   ;;  %s758_s18 = smov [#allocation13]   ;;  %s370_s0 = int_to_ptr.vmem [resolvable:$true] %s369_s0 }
 0x24c   :  { %s380_s22 = sshll.u32 %s758_s18, 4  ;;  %s382_s8 = sshll.u32 %s942_s7, 4  ;;  %s381_s22 = int_to_ptr.vmem [resolvable:$true] %s380_s22  ;;  %s383_s8 = int_to_ptr.hbm [resolvable:$true] %s382_s8 }
 0x24d   :  { %v327_v48 = vmul.f32 %v326_v47, %v326_v47 }
 0x24f   :  { %v319_v46 = vld [vmem:[#allocation3] sm:$0xff]  ;;  %328 = vadd.xlane.f32.xlu0 %v327_v48 }
 0x250   :  { %454 = vlog2.f32 %v319_v46 }
 0x256   :  { %v455_v49 = vpop.eup %454 }
 0x257   :  { %v321_v51 = vmul.f32 0.6931472, %v455_v49 }
 0x259   :  { %v322_v53 = vadd.f32 %v321_v51, %v318_v50 }
 0x25b   :  { %v324_v54 = vsub.f32 %v322_v53, %v323_v52 }
 0x25d   :  { %v338_v55 = vsel %vm228_vm0, %v324_v54, 0.0 }
 0x25e   :  { %339 = vadd.xlane.f32.xlu0 %v338_v55 }
 0x2c2   :  { %v329_v56 = vpop.xlane.xlu0 %328 }
 0x2c3   :  { %v330_v57 = vmul.f32 0.5, %v329_v56 }
 0x2c5   :  { %v352_v58 = vsel %vm228_vm0, %v330_v57, 0.0 }
 0x2c6   :  { %353 = vadd.xlane.f32.xlu1 %v352_v58 }
 0x2d1   :  { %v340_v59 = vpop.xlane.xlu0 %339 }
 0x2d2   :  { %v341_v60 = vrot.slane %v340_v59, 4 }
 0x2d4   :  { %v342_v61 = vadd.f32 %v341_v60, %v340_v59 }
 0x2d6   :  { %v343_v62 = vrot.slane %v342_v61, 2 }
 0x2d8   :  { %v344_v63 = vadd.f32 %v343_v62, %v342_v61 }
 0x2da   :  { %v345_v0 = vrot.slane %v344_v63, 1 }
 0x2dc   :  { %v346_v1 = vadd.f32 %v345_v0, %v344_v63 }
 0x2de   :  { %426 = vpush %v346_v1 }
 0x30f   :  { %s427_s28 = spop %426 }
 0x310   :  { %v348_v9 = vstv %s427_s28 }
 0x311   :  { %350 = vst.msk [vmem:[#allocation12] sm:$0x1] %vm349_vm2, %v348_v9 }
 0x312   :  { %374 = dma.vmem_to_hbm [thread:$0]  %s370_s0, 16, %s372_s27, [#allocation11]  }
 0x339   :  { %v354_v2 = vpop.xlane.xlu1 %353 }
 0x33a   :  { %v355_v3 = vrot.slane %v354_v2, 4 }
 0x33c   :  { %v356_v4 = vadd.f32 %v355_v3, %v354_v2 }
 0x33e   :  { %v357_v5 = vrot.slane %v356_v4, 2 }
 0x340   :  { %v358_v6 = vadd.f32 %v357_v5, %v356_v4 }
 0x342   :  { %v359_v7 = vrot.slane %v358_v6, 1 }
 0x344   :  { %v360_v8 = vadd.f32 %v359_v7, %v358_v6 }
 0x346   :  { %428 = vpush %v360_v8 }
 0x377   :  { %s429_s9 = spop %428 }
 0x378   :  { %v362_v10 = vstv %s429_s9 }
 0x379   :  { %363 = vst.msk [vmem:[#allocation13] sm:$0x1] %vm349_vm2, %v362_v10 }
 0x37a   :  { %385 = dma.vmem_to_hbm [thread:$0]  %s381_s22, 16, %s383_s8, [#allocation14]  }
 0x37b   :  { %738 = dma.done.wait [#allocation11], 16  }
 0x37c   :  { %739 = vsyncadd [#allocation11], 4294967280 }
 0x37d   :  { %740 = dma.done.wait [#allocation14], 16  }
 0x37e   :  { %741 = vsyncadd [#allocation14], 4294967280 }
 0x37f   :  { %394 = vsyncpa [#allocation10], 1 }
 0x380   :  { %395 = vsyncpa [#allocation11], 1 }
 0x381   :  { %396 = vsyncpa [#allocation14], 1 }
 0x382   :  { %397 = vsyncmov [#allocation6] }
 0x385   :  { %s398_s6 = vpop.sfrf %397 }
 0x386   :  { %p425_p12 = scmp.ne.s32.totalorder %s398_s6, 0 }
 0x388   :  { %402 = shalt.err (%p425_p12)  }

</bundles_post_ra>
